<compile_context>
chip_gen: v5e
topology: v5e:2x2
jax: 0.10.0
libtpu: 0.0.40
codegen_flags: <defaults>
</compile_context>

<pallas_src>
import functools

import numpy as np

import jax
import jax.numpy as jnp
from jax.experimental import pallas as pl
from jax.experimental.pallas import tpu as pltpu


# --------------------------- host-side weight prep ---------------------------


def _fold_scale_oihw(w_oihw, scale):
    """Fold a per-output-channel BN scale into OIHW conv weights (f32 numpy)."""
    w = np.asarray(w_oihw, np.float32)
    s = np.asarray(scale, np.float32)
    return w * s[:, None, None, None]


def _banded_w3x3(w_oihw, scale, w_in, w_out, stride):
    """Banded matmul weights for a 3x3 'same' conv over width-flattened rows.

    Returns (3, w_in*cin, w_out*cout) f32 with
      W[ky, q*cin + ci, j*cout + co] = w[co, ci, ky, kx] * scale[co],
      q = j*stride + kx - 1  (taps falling outside [0, w_in) are dropped, i.e.
      the column zero-padding of the conv is folded into the weights).
    """
    cout, cin = w_oihw.shape[:2]
    wf = _fold_scale_oihw(w_oihw, scale)                    # (cout, cin, 3, 3)
    big = np.zeros((3, w_in * cin, w_out * cout), np.float32)
    for ky in range(3):
        for kx in range(3):
            blk = wf[:, :, ky, kx].T                        # (cin, cout)
            for j in range(w_out):
                q = j * stride + kx - 1
                if 0 <= q < w_in:
                    big[ky, q * cin:(q + 1) * cin, j * cout:(j + 1) * cout] = blk
    return big


def _banded_w1x1(ws_oihw, scale, w_in, w_out, stride):
    """Banded weights for the 1x1/stride projection shortcut (no padding)."""
    cout, cin = ws_oihw.shape[:2]
    blk = _fold_scale_oihw(ws_oihw, scale)[:, :, 0, 0].T    # (cin, cout)
    big = np.zeros((w_in * cin, w_out * cout), np.float32)
    for j in range(w_out):
        q = j * stride
        big[q * cin:(q + 1) * cin, j * cout:(j + 1) * cout] = blk
    return big


def _vmem_limit_bytes(per_step_bytes):
    # double-buffered pipeline blocks + compiler headroom, clamped to a sane range
    need = 2 * int(per_step_bytes) + (8 << 20)
    return int(min(max(need, 32 << 20), 100 << 20))


# ----------------------- width-folded kernel (small C) -----------------------


def _widthfold_kernel(*refs, stride, has_proj, h, w, cin, ho, wo, cout):
    if has_proj:
        (x_ref, w1_ref, b1_ref, w2_ref, b2_ref, ws_ref, bs_ref,
         out_ref, xrp, hrp) = refs
    else:
        (x_ref, w1_ref, b1_ref, w2_ref, b2_ref, out_ref, xrp, hrp) = refs

    # Row-padded (rows only) copy of x; column zero-padding is folded into the
    # banded weights, so only the two halo rows need zeroing (cheap, per step,
    # correct regardless of how the batch grid is split across cores).
    xrp[0:1, :] = jnp.zeros((1, w * cin), xrp.dtype)
    xrp[h + 1:h + 2, :] = jnp.zeros((1, w * cin), xrp.dtype)
    xrp[1:h + 1, :] = x_ref[0].astype(xrp.dtype)

    def rows(ref, ky, n, s):
        if s == 1:
            return ref[ky:ky + n, :]
        return ref[pl.ds(ky, n, stride=s), :]

    # conv1 (+ folded BN1 scale): 3 lane-dense matmuls, acc init from ky=0.
    acc = jnp.dot(rows(xrp, 0, ho, stride), w1_ref[0],
                  preferred_element_type=jnp.float32)
    for ky in (1, 2):
        acc += jnp.dot(rows(xrp, ky, ho, stride), w1_ref[ky],
                       preferred_element_type=jnp.float32)
    h1 = jnp.maximum(acc + b1_ref[...], 0.0)                # (ho, wo*cout) f32

    hrp[0:1, :] = jnp.zeros((1, wo * cout), hrp.dtype)
    hrp[ho + 1:ho + 2, :] = jnp.zeros((1, wo * cout), hrp.dtype)
    hrp[1:ho + 1, :] = h1.astype(hrp.dtype)

    # conv2 (+ folded BN2 scale), stride 1.
    acc2 = jnp.dot(hrp[0:ho, :], w2_ref[0], preferred_element_type=jnp.float32)
    for ky in (1, 2):
        acc2 += jnp.dot(hrp[ky:ky + ho, :], w2_ref[ky],
                        preferred_element_type=jnp.float32)
    y = acc2 + b2_ref[...]

    # shortcut
    if has_proj:
        if stride == 1:
            xs = x_ref[0]
        else:
            xs = x_ref[0, pl.ds(0, ho, stride=stride), :]
        sc = jnp.dot(xs, ws_ref[...], preferred_element_type=jnp.float32)
        sc = sc + bs_ref[...]
    else:
        sc = x_ref[0].astype(jnp.float32)                   # (ho, wo*cout)

    res = jnp.maximum(y + sc, 0.0)
    out_ref[...] = res.reshape(1, ho, wo * cout).astype(out_ref.dtype)


def _residual_block_widthfold(x_nhwc, p, stride, cdt):
    n, h, w, cin = x_nhwc.shape
    cout = p["w1"].shape[0]
    ho = (h - 1) // stride + 1
    wo = (w - 1) // stride + 1
    has_proj = "ws" in p

    # lane-dense presentation: (N, H, W*Cin) in, (N, Ho, Wo*Cout) out
    x2d = x_nhwc.reshape(n, h, w * cin).astype(cdt)
    w1b = jnp.asarray(_banded_w3x3(p["w1"], p["s1"], w, wo, stride), dtype=cdt)
    w2b = jnp.asarray(_banded_w3x3(p["w2"], p["s2"], wo, wo, 1), dtype=cdt)
    b1t = jnp.tile(p["b1"].astype(jnp.float32), wo).reshape(1, wo * cout)
    b2t = jnp.tile(p["b2"].astype(jnp.float32), wo).reshape(1, wo * cout)

    inputs = [x2d, w1b, b1t, w2b, b2t]
    in_specs = [
        pl.BlockSpec((1, h, w * cin), lambda b: (b, 0, 0)),
        pl.BlockSpec(w1b.shape, lambda b: (0, 0, 0)),
        pl.BlockSpec(b1t.shape, lambda b: (0, 0)),
        pl.BlockSpec(w2b.shape, lambda b: (0, 0, 0)),
        pl.BlockSpec(b2t.shape, lambda b: (0, 0)),
    ]
    if has_proj:
        wsb = jnp.asarray(_banded_w1x1(p["ws"], p["ss"], w, wo, stride), dtype=cdt)
        bst = jnp.tile(p["bs"].astype(jnp.float32), wo).reshape(1, wo * cout)
        inputs += [wsb, bst]
        in_specs += [pl.BlockSpec(wsb.shape, lambda b: (0, 0)),
                     pl.BlockSpec(bst.shape, lambda b: (0, 0))]

    isz = np.dtype(cdt).itemsize
    osz = x_nhwc.dtype.itemsize
    per_step = h * w * cin * isz + ho * wo * cout * osz
    per_step += sum(a.size * a.dtype.itemsize for a in inputs[1:])
    per_step += ((h + 2) * w * cin + (ho + 2) * wo * cout) * isz

    kern = functools.partial(_widthfold_kernel, stride=stride, has_proj=has_proj,
                             h=h, w=w, cin=cin, ho=ho, wo=wo, cout=cout)
    out2d = pl.pallas_call(
        kern,
        out_shape=jax.ShapeDtypeStruct((n, ho, wo * cout), x_nhwc.dtype),
        grid=(n,),
        in_specs=in_specs,
        out_specs=pl.BlockSpec((1, ho, wo * cout), lambda b: (b, 0, 0)),
        scratch_shapes=[
            pltpu.VMEM((h + 2, w * cin), cdt),      # row-padded input
            pltpu.VMEM((ho + 2, wo * cout), cdt),   # row-padded conv1 output
        ],
        compiler_params=pltpu.CompilerParams(
            dimension_semantics=("parallel",),
            vmem_limit_bytes=_vmem_limit_bytes(per_step)),
    )(*inputs)
    return out2d.reshape(n, ho, wo, cout)


# ---------------------- channel-major kernel (Cout >= 128) -------------------


def _chanmajor_kernel(*refs, stride, has_proj):
    if has_proj:
        (x_ref, w1_ref, b1_ref, w2_ref, b2_ref, ws_ref, bs_ref,
         out_ref, xpad, hpad) = refs
    else:
        (x_ref, w1_ref, b1_ref, w2_ref, b2_ref, out_ref, xpad, hpad) = refs
    _, h, w, cin = x_ref.shape
    _, ho, wo, cout = out_ref.shape

    # zero only the 1-wide halo strips (per step; safe under megacore grids)
    xpad[0:1, :, :] = jnp.zeros((1, w + 2, cin), xpad.dtype)
    xpad[h + 1:h + 2, :, :] = jnp.zeros((1, w + 2, cin), xpad.dtype)
    xpad[:, 0:1, :] = jnp.zeros((h + 2, 1, cin), xpad.dtype)
    xpad[:, w + 1:w + 2, :] = jnp.zeros((h + 2, 1, cin), xpad.dtype)
    xpad[1:h + 1, 1:w + 1, :] = x_ref[0].astype(xpad.dtype)

    def conv3x3(src, wref, csrc, s):
        # 9 direct accumulating dots with K = C (no lane concatenate).
        acc = None
        for ky in range(3):
            for kx in range(3):
                if s == 1:
                    t = src[ky:ky + ho, kx:kx + wo, :]
                else:
                    t = src[pl.ds(ky, ho, stride=s), pl.ds(kx, wo, stride=s), :]
                d = jnp.dot(t.reshape(ho * wo, csrc), wref[ky * 3 + kx],
                            preferred_element_type=jnp.float32)
                acc = d if acc is None else acc + d
        return acc

    h1 = jnp.maximum(conv3x3(xpad, w1_ref, cin, stride) + b1_ref[...], 0.0)

    hpad[0:1, :, :] = jnp.zeros((1, wo + 2, cout), hpad.dtype)
    hpad[ho + 1:ho + 2, :, :] = jnp.zeros((1, wo + 2, cout), hpad.dtype)
    hpad[:, 0:1, :] = jnp.zeros((ho + 2, 1, cout), hpad.dtype)
    hpad[:, wo + 1:wo + 2, :] = jnp.zeros((ho + 2, 1, cout), hpad.dtype)
    hpad[1:ho + 1, 1:wo + 1, :] = h1.reshape(ho, wo, cout).astype(hpad.dtype)

    y = conv3x3(hpad, w2_ref, cout, 1) + b2_ref[...]

    if has_proj:
        if stride == 1:
            xs = x_ref[0]
        else:
            xs = x_ref[0, pl.ds(0, ho, stride=stride),
                       pl.ds(0, wo, stride=stride), :]
        sc = jnp.dot(xs.reshape(ho * wo, cin).astype(ws_ref.dtype), ws_ref[...],
                     preferred_element_type=jnp.float32) + bs_ref[...]
    else:
        sc = x_ref[0].reshape(ho * wo, cout).astype(jnp.float32)

    out = jnp.maximum(y + sc, 0.0)
    out_ref[...] = out.reshape(1, ho, wo, cout).astype(out_ref.dtype)


def _residual_block_chanmajor(x_nhwc, p, stride, cdt):
    n, h, w, cin = x_nhwc.shape
    cout = p["w1"].shape[0]
    ho = (h - 1) // stride + 1
    wo = (w - 1) // stride + 1
    has_proj = "ws" in p

    xc = x_nhwc.astype(cdt)
    # folded weights, tap-major layout (9, Cin, Cout)
    w1f = jnp.asarray(np.transpose(_fold_scale_oihw(p["w1"], p["s1"]),
                                   (2, 3, 1, 0)).reshape(9, cin, cout), dtype=cdt)
    w2f = jnp.asarray(np.transpose(_fold_scale_oihw(p["w2"], p["s2"]),
                                   (2, 3, 1, 0)).reshape(9, cout, cout), dtype=cdt)
    b1 = p["b1"].astype(jnp.float32).reshape(1, cout)
    b2 = p["b2"].astype(jnp.float32).reshape(1, cout)

    inputs = [xc, w1f, b1, w2f, b2]
    in_specs = [
        pl.BlockSpec((1, h, w, cin), lambda b: (b, 0, 0, 0)),
        pl.BlockSpec(w1f.shape, lambda b: (0, 0, 0)),
        pl.BlockSpec((1, cout), lambda b: (0, 0)),
        pl.BlockSpec(w2f.shape, lambda b: (0, 0, 0)),
        pl.BlockSpec((1, cout), lambda b: (0, 0)),
    ]
    if has_proj:
        wsf = jnp.asarray(_fold_scale_oihw(p["ws"], p["ss"])[:, :, 0, 0].T,
                          dtype=cdt)
        bs = p["bs"].astype(jnp.float32).reshape(1, cout)
        inputs += [wsf, bs]
        in_specs += [pl.BlockSpec((cin, cout), lambda b: (0, 0)),
                     pl.BlockSpec((1, cout), lambda b: (0, 0))]

    isz = np.dtype(cdt).itemsize
    osz = x_nhwc.dtype.itemsize
    per_step = h * w * cin * isz + ho * wo * cout * osz
    per_step += sum(a.size * a.dtype.itemsize for a in inputs[1:])
    per_step += ((h + 2) * (w + 2) * cin + (ho + 2) * (wo + 2) * cout) * isz

    kern = functools.partial(_chanmajor_kernel, stride=stride, has_proj=has_proj)
    return pl.pallas_call(
        kern,
        out_shape=jax.ShapeDtypeStruct((n, ho, wo, cout), x_nhwc.dtype),
        grid=(n,),
        in_specs=in_specs,
        out_specs=pl.BlockSpec((1, ho, wo, cout), lambda b: (b, 0, 0, 0)),
        scratch_shapes=[
            pltpu.VMEM((h + 2, w + 2, cin), cdt),
            pltpu.VMEM((ho + 2, wo + 2, cout), cdt),
        ],
        compiler_params=pltpu.CompilerParams(
            dimension_semantics=("parallel",),
            vmem_limit_bytes=_vmem_limit_bytes(per_step)),
    )(*inputs)


# --------------------------------- wrapper -----------------------------------


def residual_block(x_nhwc, params, *, stride=1, compute_dtype=jnp.float32):
    """Fused ResidualBlock forward, NHWC in / NHWC out (single pallas_call)."""
    n, h, w, cin = x_nhwc.shape
    cout = params["w1"].shape[0]
    has_proj = "ws" in params
    if not has_proj and (stride != 1 or cin != cout):
        raise ValueError("identity shortcut requires stride == 1 and cin == cout")
    wo = (w - 1) // stride + 1

    # Width-folded (lane-dense) path for small channel counts; channel-major
    # path when Cout already fills the lane axis or the banded weights would
    # be too large.
    kn1 = 3 * (w * cin) * (wo * cout)
    kn2 = 3 * (wo * cout) * (wo * cout)
    if cout < 128 and max(kn1, kn2) <= (1 << 21):
        return _residual_block_widthfold(x_nhwc, params, stride, compute_dtype)
    return _residual_block_chanmajor(x_nhwc, params, stride, compute_dtype)


# --------------------------- parameters & reference --------------------------


def _bn_affine(key, c):
    k1, k2, k3, k4 = jax.random.split(key, 4)
    gamma = 1.0 + 0.1 * jax.random.normal(k1, (c,), jnp.float32)
    beta = 0.1 * jax.random.normal(k2, (c,), jnp.float32)
    mean = 0.1 * jax.random.normal(k3, (c,), jnp.float32)
    var = 1.0 + 0.1 * jax.random.uniform(k4, (c,), jnp.float32)
    scale = gamma / jnp.sqrt(var + 1e-5)
    bias = beta - mean * scale
    return scale, bias


def init_params(key, cin, cout, stride):
    # Conv biases of the PyTorch module fold into the eval-mode BN bias term,
    # so the (scale, bias) affine parameterization covers them.
    ks = jax.random.split(key, 6)
    p = {"w1": 0.1 * jax.random.normal(ks[0], (cout, cin, 3, 3), jnp.float32),
         "w2": 0.1 * jax.random.normal(ks[1], (cout, cout, 3, 3), jnp.float32)}
    p["s1"], p["b1"] = _bn_affine(ks[2], cout)
    p["s2"], p["b2"] = _bn_affine(ks[3], cout)
    if stride != 1 or cin != cout:
        p["ws"] = 0.1 * jax.random.normal(ks[4], (cout, cin, 1, 1), jnp.float32)
        p["ss"], p["bs"] = _bn_affine(ks[5], cout)
    return p


def _ref_residual_block(x_nhwc, p, stride):
    dn = ("NHWC", "OIHW", "NHWC")
    prec = jax.lax.Precision.HIGHEST

    def conv(x, wgt, s, pad):
        return jax.lax.conv_general_dilated(x, wgt, (s, s), pad,
                                            dimension_numbers=dn, precision=prec)

    out = conv(x_nhwc, p["w1"], stride, ((1, 1), (1, 1)))
    out = jnp.maximum(out * p["s1"] + p["b1"], 0.0)
    out = conv(out, p["w2"], 1, ((1, 1), (1, 1)))
    out = out * p["s2"] + p["b2"]
    if "ws" in p:
        sc = conv(x_nhwc, p["ws"], stride, ((0, 0), (0, 0))) * p["ss"] + p["bs"]
    else:
        sc = x_nhwc
    return jnp.maximum(out + sc, 0.0)


# ----------------------------------- main -------------------------------------


if __name__ == "__main__":
    key = jax.random.PRNGKey(0)
    kx1, kp1, kx2, kp2, kx3, kp3 = jax.random.split(key, 6)

    # --- Config 1: projection shortcut (Cin != Cout), stride 1, small C ------
    N, Cin, Cout, H, W, stride = 2, 4, 8, 16, 16, 1
    x_nchw = jax.random.normal(kx1, (N, Cin, H, W), jnp.float32)
    x1 = jnp.transpose(x_nchw, (0, 2, 3, 1))   # NHWC (transpose is harness-only)
    p1 = init_params(kp1, Cin, Cout, stride)

    out1 = jax.block_until_ready(residual_block(x1, p1, stride=stride))
    ref1 = _ref_residual_block(x1, p1, stride)
    assert out1.shape == ref1.shape, (out1.shape, ref1.shape)
    err1 = float(jnp.max(jnp.abs(out1 - ref1)))
    assert err1 < 2e-3, f"f32 projection path: max abs err {err1}"

    # bf16 knob (v6e/v7x): bf16 activations/weights/scratch, f32 accumulation
    out1b = jax.block_until_ready(
        residual_block(x1, p1, stride=stride, compute_dtype=jnp.bfloat16))
    err1b = float(jnp.max(jnp.abs(out1b - ref1)))
    assert err1b < 5e-2, f"bf16 projection path: max abs err {err1b}"

    # --- Config 2: identity shortcut (Cin == Cout, stride 1) -----------------
    x2 = jax.random.normal(kx2, (2, 16, 16, 8), jnp.float32)   # NHWC
    p2 = init_params(kp2, 8, 8, 1)
    out2 = jax.block_until_ready(residual_block(x2, p2, stride=1))
    ref2 = _ref_residual_block(x2, p2, 1)
    err2 = float(jnp.max(jnp.abs(out2 - ref2)))
    assert err2 < 2e-3, f"f32 identity path: max abs err {err2}"

    # --- Config 3: larger channels -> channel-major path (Cout >= 128) -------
    x3 = jax.random.normal(kx3, (1, 8, 8, 64), jnp.float32)    # NHWC
    p3 = init_params(kp3, 64, 128, 1)
    out3 = jax.block_until_ready(residual_block(x3, p3, stride=1))
    ref3 = _ref_residual_block(x3, p3, 1)
    err3 = float(jnp.max(jnp.abs(out3 - ref3)))
    assert err3 < 2e-2, f"f32 channel-major path: max abs err {err3}"

    print("KERNEL_OK")
</pallas_src>

<mosaic_0001>
module attributes {stable_mosaic.version = 11 : i64} {
  func.func @_widthfold_kernel(%arg0: i32, %arg1: memref<1x16x64xf32, #tpu.memory_space<vmem>>, %arg2: memref<3x64x128xf32, #tpu.memory_space<vmem>>, %arg3: memref<1x128xf32, #tpu.memory_space<vmem>>, %arg4: memref<3x128x128xf32, #tpu.memory_space<vmem>>, %arg5: memref<1x128xf32, #tpu.memory_space<vmem>>, %arg6: memref<64x128xf32, #tpu.memory_space<vmem>>, %arg7: memref<1x128xf32, #tpu.memory_space<vmem>>, %arg8: memref<1x16x128xf32, #tpu.memory_space<vmem>>, %arg9: memref<18x64xf32, #tpu.memory_space<vmem>>, %arg10: memref<18x128xf32, #tpu.memory_space<vmem>>) attributes {dimension_semantics = [#tpu.dimension_semantics<parallel>], iteration_bounds = array<i64: 2>, scalar_prefetch = 0 : i64, scratch_operands = 2 : i64, tpu.core_type = #tpu.core_type<tc>, window_params = [{transform_indices = @transform_0, window_bounds = array<i64: 1, 16, 64>}, {pipeline_mode = #tpu.pipeline_mode<synchronous>, transform_indices = @transform_1, window_bounds = array<i64: 3, 64, 128>}, {pipeline_mode = #tpu.pipeline_mode<synchronous>, transform_indices = @transform_2, window_bounds = array<i64: 1, 128>}, {pipeline_mode = #tpu.pipeline_mode<synchronous>, transform_indices = @transform_3, window_bounds = array<i64: 3, 128, 128>}, {pipeline_mode = #tpu.pipeline_mode<synchronous>, transform_indices = @transform_4, window_bounds = array<i64: 1, 128>}, {pipeline_mode = #tpu.pipeline_mode<synchronous>, transform_indices = @transform_5, window_bounds = array<i64: 64, 128>}, {pipeline_mode = #tpu.pipeline_mode<synchronous>, transform_indices = @transform_6, window_bounds = array<i64: 1, 128>}, {transform_indices = @transform_7, window_bounds = array<i64: 1, 16, 128>}]} {
    %cst = arith.constant 0.000000e+00 : f32
    %0 = vector.broadcast %cst : f32 to vector<1x64xf32>
    %c0 = arith.constant 0 : index
    %c0_0 = arith.constant 0 : index
    %1 = vector.load %arg9[%c0, %c0_0] : memref<18x64xf32, #tpu.memory_space<vmem>>, vector<1x64xf32>
    tpu.vector_store %arg9[%c0, %c0_0], %0 {strides = array<i32>} : memref<18x64xf32, #tpu.memory_space<vmem>>, vector<1x64xf32>,
    %cst_1 = arith.constant 0.000000e+00 : f32
    %2 = vector.broadcast %cst_1 : f32 to vector<1x64xf32>
    %c17 = arith.constant 17 : index
    %c0_2 = arith.constant 0 : index
    %3 = vector.load %arg9[%c17, %c0_2] : memref<18x64xf32, #tpu.memory_space<vmem>>, vector<1x64xf32>
    tpu.vector_store %arg9[%c17, %c0_2], %2 {strides = array<i32>} : memref<18x64xf32, #tpu.memory_space<vmem>>, vector<1x64xf32>,
    %c0_3 = arith.constant 0 : index
    %c0_4 = arith.constant 0 : index
    %c0_5 = arith.constant 0 : index
    %4 = vector.load %arg1[%c0_3, %c0_4, %c0_5] : memref<1x16x64xf32, #tpu.memory_space<vmem>>, vector<1x16x64xf32>
    %5 = vector.shape_cast %4 : vector<1x16x64xf32> to vector<16x64xf32>
    %c1 = arith.constant 1 : index
    %c0_6 = arith.constant 0 : index
    %6 = vector.load %arg9[%c1, %c0_6] : memref<18x64xf32, #tpu.memory_space<vmem>>, vector<16x64xf32>
    tpu.vector_store %arg9[%c1, %c0_6], %5 {strides = array<i32>} : memref<18x64xf32, #tpu.memory_space<vmem>>, vector<16x64xf32>,
    %c0_7 = arith.constant 0 : index
    %c0_8 = arith.constant 0 : index
    %7 = vector.load %arg9[%c0_7, %c0_8] : memref<18x64xf32, #tpu.memory_space<vmem>>, vector<16x64xf32>
    %c0_9 = arith.constant 0 : index
    %c0_10 = arith.constant 0 : index
    %c0_11 = arith.constant 0 : index
    %8 = vector.load %arg2[%c0_9, %c0_10, %c0_11] : memref<3x64x128xf32, #tpu.memory_space<vmem>>, vector<1x64x128xf32>
    %9 = vector.shape_cast %8 : vector<1x64x128xf32> to vector<64x128xf32>
    %cst_12 = arith.constant dense<0.000000e+00> : vector<16x128xf32>
    %10 = tpu.matmul %7, %9, %cst_12 {dimension_numbers = #tpu.dot_dimension_numbers<[1], [0], [0], [1], [0, 0, 1, 1], [], []>} : vector<16x64xf32>, vector<64x128xf32>, vector<16x128xf32> -> vector<16x128xf32>
    %c1_13 = arith.constant 1 : index
    %c0_14 = arith.constant 0 : index
    %11 = vector.load %arg9[%c1_13, %c0_14] : memref<18x64xf32, #tpu.memory_space<vmem>>, vector<16x64xf32>
    %c1_15 = arith.constant 1 : index
    %c0_16 = arith.constant 0 : index
    %c0_17 = arith.constant 0 : index
    %12 = vector.load %arg2[%c1_15, %c0_16, %c0_17] : memref<3x64x128xf32, #tpu.memory_space<vmem>>, vector<1x64x128xf32>
    %13 = vector.shape_cast %12 : vector<1x64x128xf32> to vector<64x128xf32>
    %cst_18 = arith.constant dense<0.000000e+00> : vector<16x128xf32>
    %14 = tpu.matmul %11, %13, %cst_18 {dimension_numbers = #tpu.dot_dimension_numbers<[1], [0], [0], [1], [0, 0, 1, 1], [], []>} : vector<16x64xf32>, vector<64x128xf32>, vector<16x128xf32> -> vector<16x128xf32>
    %15 = arith.addf %10, %14 : vector<16x128xf32>
    %c2 = arith.constant 2 : index
    %c0_19 = arith.constant 0 : index
    %16 = vector.load %arg9[%c2, %c0_19] : memref<18x64xf32, #tpu.memory_space<vmem>>, vector<16x64xf32>
    %c2_20 = arith.constant 2 : index
    %c0_21 = arith.constant 0 : index
    %c0_22 = arith.constant 0 : index
    %17 = vector.load %arg2[%c2_20, %c0_21, %c0_22] : memref<3x64x128xf32, #tpu.memory_space<vmem>>, vector<1x64x128xf32>
    %18 = vector.shape_cast %17 : vector<1x64x128xf32> to vector<64x128xf32>
    %cst_23 = arith.constant dense<0.000000e+00> : vector<16x128xf32>
    %19 = tpu.matmul %16, %18, %cst_23 {dimension_numbers = #tpu.dot_dimension_numbers<[1], [0], [0], [1], [0, 0, 1, 1], [], []>} : vector<16x64xf32>, vector<64x128xf32>, vector<16x128xf32> -> vector<16x128xf32>
    %20 = arith.addf %15, %19 : vector<16x128xf32>
    %c0_24 = arith.constant 0 : index
    %c0_25 = arith.constant 0 : index
    %21 = vector.load %arg3[%c0_24, %c0_25] : memref<1x128xf32, #tpu.memory_space<vmem>>, vector<1x128xf32>
    %22 = vector.broadcast %21 : vector<1x128xf32> to vector<16x128xf32>
    %23 = arith.addf %20, %22 : vector<16x128xf32>
    %cst_26 = arith.constant 0.000000e+00 : f32
    %24 = vector.broadcast %cst_26 : f32 to vector<16x128xf32>
    %25 = arith.maximumf %23, %24 : vector<16x128xf32>
    %cst_27 = arith.constant 0.000000e+00 : f32
    %26 = vector.broadcast %cst_27 : f32 to vector<1x128xf32>
    %c0_28 = arith.constant 0 : index
    %c0_29 = arith.constant 0 : index
    %27 = vector.load %arg10[%c0_28, %c0_29] : memref<18x128xf32, #tpu.memory_space<vmem>>, vector<1x128xf32>
    tpu.vector_store %arg10[%c0_28, %c0_29], %26 {strides = array<i32>} : memref<18x128xf32, #tpu.memory_space<vmem>>, vector<1x128xf32>,
    %cst_30 = arith.constant 0.000000e+00 : f32
    %28 = vector.broadcast %cst_30 : f32 to vector<1x128xf32>
    %c17_31 = arith.constant 17 : index
    %c0_32 = arith.constant 0 : index
    %29 = vector.load %arg10[%c17_31, %c0_32] : memref<18x128xf32, #tpu.memory_space<vmem>>, vector<1x128xf32>
    tpu.vector_store %arg10[%c17_31, %c0_32], %28 {strides = array<i32>} : memref<18x128xf32, #tpu.memory_space<vmem>>, vector<1x128xf32>,
    %c1_33 = arith.constant 1 : index
    %c0_34 = arith.constant 0 : index
    %30 = vector.load %arg10[%c1_33, %c0_34] : memref<18x128xf32, #tpu.memory_space<vmem>>, vector<16x128xf32>
    tpu.vector_store %arg10[%c1_33, %c0_34], %25 {strides = array<i32>} : memref<18x128xf32, #tpu.memory_space<vmem>>, vector<16x128xf32>,
    %c0_35 = arith.constant 0 : index
    %c0_36 = arith.constant 0 : index
    %31 = vector.load %arg10[%c0_35, %c0_36] : memref<18x128xf32, #tpu.memory_space<vmem>>, vector<16x128xf32>
    %c0_37 = arith.constant 0 : index
    %c0_38 = arith.constant 0 : index
    %c0_39 = arith.constant 0 : index
    %32 = vector.load %arg4[%c0_37, %c0_38, %c0_39] : memref<3x128x128xf32, #tpu.memory_space<vmem>>, vector<1x128x128xf32>
    %33 = vector.shape_cast %32 : vector<1x128x128xf32> to vector<128x128xf32>
    %cst_40 = arith.constant dense<0.000000e+00> : vector<16x128xf32>
    %34 = tpu.matmul %31, %33, %cst_40 {dimension_numbers = #tpu.dot_dimension_numbers<[1], [0], [0], [1], [0, 0, 1, 1], [], []>} : vector<16x128xf32>, vector<128x128xf32>, vector<16x128xf32> -> vector<16x128xf32>
    %c1_41 = arith.constant 1 : index
    %c0_42 = arith.constant 0 : index
    %35 = vector.load %arg10[%c1_41, %c0_42] : memref<18x128xf32, #tpu.memory_space<vmem>>, vector<16x128xf32>
    %c1_43 = arith.constant 1 : index
    %c0_44 = arith.constant 0 : index
    %c0_45 = arith.constant 0 : index
    %36 = vector.load %arg4[%c1_43, %c0_44, %c0_45] : memref<3x128x128xf32, #tpu.memory_space<vmem>>, vector<1x128x128xf32>
    %37 = vector.shape_cast %36 : vector<1x128x128xf32> to vector<128x128xf32>
    %cst_46 = arith.constant dense<0.000000e+00> : vector<16x128xf32>
    %38 = tpu.matmul %35, %37, %cst_46 {dimension_numbers = #tpu.dot_dimension_numbers<[1], [0], [0], [1], [0, 0, 1, 1], [], []>} : vector<16x128xf32>, vector<128x128xf32>, vector<16x128xf32> -> vector<16x128xf32>
    %39 = arith.addf %34, %38 : vector<16x128xf32>
    %c2_47 = arith.constant 2 : index
    %c0_48 = arith.constant 0 : index
    %40 = vector.load %arg10[%c2_47, %c0_48] : memref<18x128xf32, #tpu.memory_space<vmem>>, vector<16x128xf32>
    %c2_49 = arith.constant 2 : index
    %c0_50 = arith.constant 0 : index
    %c0_51 = arith.constant 0 : index
    %41 = vector.load %arg4[%c2_49, %c0_50, %c0_51] : memref<3x128x128xf32, #tpu.memory_space<vmem>>, vector<1x128x128xf32>
    %42 = vector.shape_cast %41 : vector<1x128x128xf32> to vector<128x128xf32>
    %cst_52 = arith.constant dense<0.000000e+00> : vector<16x128xf32>
    %43 = tpu.matmul %40, %42, %cst_52 {dimension_numbers = #tpu.dot_dimension_numbers<[1], [0], [0], [1], [0, 0, 1, 1], [], []>} : vector<16x128xf32>, vector<128x128xf32>, vector<16x128xf32> -> vector<16x128xf32>
    %44 = arith.addf %39, %43 : vector<16x128xf32>
    %c0_53 = arith.constant 0 : index
    %c0_54 = arith.constant 0 : index
    %45 = vector.load %arg5[%c0_53, %c0_54] : memref<1x128xf32, #tpu.memory_space<vmem>>, vector<1x128xf32>
    %46 = vector.broadcast %45 : vector<1x128xf32> to vector<16x128xf32>
    %47 = arith.addf %44, %46 : vector<16x128xf32>
    %c0_55 = arith.constant 0 : index
    %c0_56 = arith.constant 0 : index
    %c0_57 = arith.constant 0 : index
    %48 = vector.load %arg1[%c0_55, %c0_56, %c0_57] : memref<1x16x64xf32, #tpu.memory_space<vmem>>, vector<1x16x64xf32>
    %49 = vector.shape_cast %48 : vector<1x16x64xf32> to vector<16x64xf32>
    %c0_58 = arith.constant 0 : index
    %c0_59 = arith.constant 0 : index
    %50 = vector.load %arg6[%c0_58, %c0_59] : memref<64x128xf32, #tpu.memory_space<vmem>>, vector<64x128xf32>
    %cst_60 = arith.constant dense<0.000000e+00> : vector<16x128xf32>
    %51 = tpu.matmul %49, %50, %cst_60 {dimension_numbers = #tpu.dot_dimension_numbers<[1], [0], [0], [1], [0, 0, 1, 1], [], []>} : vector<16x64xf32>, vector<64x128xf32>, vector<16x128xf32> -> vector<16x128xf32>
    %c0_61 = arith.constant 0 : index
    %c0_62 = arith.constant 0 : index
    %52 = vector.load %arg7[%c0_61, %c0_62] : memref<1x128xf32, #tpu.memory_space<vmem>>, vector<1x128xf32>
    %53 = vector.broadcast %52 : vector<1x128xf32> to vector<16x128xf32>
    %54 = arith.addf %51, %53 : vector<16x128xf32>
    %55 = arith.addf %47, %54 : vector<16x128xf32>
    %cst_63 = arith.constant 0.000000e+00 : f32
    %56 = vector.broadcast %cst_63 : f32 to vector<16x128xf32>
    %57 = arith.maximumf %55, %56 : vector<16x128xf32>
    %58 = vector.shape_cast %57 : vector<16x128xf32> to vector<1x16x128xf32>
    %c0_64 = arith.constant 0 : index
    %c0_65 = arith.constant 0 : index
    %c0_66 = arith.constant 0 : index
    %59 = vector.load %arg8[%c0_64, %c0_65, %c0_66] : memref<1x16x128xf32, #tpu.memory_space<vmem>>, vector<1x16x128xf32>
    tpu.vector_store %arg8[%c0_64, %c0_65, %c0_66], %58 {strides = array<i32>} : memref<1x16x128xf32, #tpu.memory_space<vmem>>, vector<1x16x128xf32>,
    return
  }
  func.func @transform_0(%arg0: i32) -> (i32, i32, i32) {
    %c0_i32 = arith.constant 0 : i32
    %c0_i32_0 = arith.constant 0 : i32
    %c0_i32_1 = arith.constant 0 : i32
    return %arg0, %c0_i32, %c0_i32_0 : i32, i32, i32
  }
  func.func @transform_1(%arg0: i32) -> (i32, i32, i32) {
    %c0_i32 = arith.constant 0 : i32
    %c0_i32_0 = arith.constant 0 : i32
    %c0_i32_1 = arith.constant 0 : i32
    %c0_i32_2 = arith.constant 0 : i32
    return %c0_i32, %c0_i32_0, %c0_i32_1 : i32, i32, i32
  }
  func.func @transform_2(%arg0: i32) -> (i32, i32) {
    %c0_i32 = arith.constant 0 : i32
    %c0_i32_0 = arith.constant 0 : i32
    %c0_i32_1 = arith.constant 0 : i32
    return %c0_i32, %c0_i32_0 : i32, i32
  }
  func.func @transform_3(%arg0: i32) -> (i32, i32, i32) {
    %c0_i32 = arith.constant 0 : i32
    %c0_i32_0 = arith.constant 0 : i32
    %c0_i32_1 = arith.constant 0 : i32
    %c0_i32_2 = arith.constant 0 : i32
    return %c0_i32, %c0_i32_0, %c0_i32_1 : i32, i32, i32
  }
  func.func @transform_4(%arg0: i32) -> (i32, i32) {
    %c0_i32 = arith.constant 0 : i32
    %c0_i32_0 = arith.constant 0 : i32
    %c0_i32_1 = arith.constant 0 : i32
    return %c0_i32, %c0_i32_0 : i32, i32
  }
  func.func @transform_5(%arg0: i32) -> (i32, i32) {
    %c0_i32 = arith.constant 0 : i32
    %c0_i32_0 = arith.constant 0 : i32
    %c0_i32_1 = arith.constant 0 : i32
    return %c0_i32, %c0_i32_0 : i32, i32
  }
  func.func @transform_6(%arg0: i32) -> (i32, i32) {
    %c0_i32 = arith.constant 0 : i32
    %c0_i32_0 = arith.constant 0 : i32
    %c0_i32_1 = arith.constant 0 : i32
    return %c0_i32, %c0_i32_0 : i32, i32
  }
  func.func @transform_7(%arg0: i32) -> (i32, i32, i32) {
    %c0_i32 = arith.constant 0 : i32
    %c0_i32_0 = arith.constant 0 : i32
    %c0_i32_1 = arith.constant 0 : i32
    return %arg0, %c0_i32, %c0_i32_0 : i32, i32, i32
  }
}

</mosaic_0001>

<bundles_post_ra>
// kernel: tpu_custom_call.1
= control target key start
LH: loop header
LB: loop body
LE: loop exit
PB: predicated region body
PF: predicated region fallthrough
CT: control target
= control target key end

     0   :  { %s1354_s0 = inlined_call_operand.hbm [shape: f32[2,16,64], index: 0, kind: input, shape index: {}]   ;;  %s1355_s1 = inlined_call_operand.hbm [shape: f32[3,64,128], index: 1, kind: input, shape index: {}]   ;;  %s1356_s2 = inlined_call_operand.vmem [shape: f32[1,128], index: 2, kind: input, shape index: {}]   ;;  %s1357_s3 = inlined_call_operand.hbm [shape: f32[3,128,128], index: 3, kind: input, shape index: {}]   ;;  %s1358_s4 = inlined_call_operand.vmem [shape: f32[1,128], index: 4, kind: input, shape index: {}]   ;;  %s1359_s5 = inlined_call_operand.hbm [shape: f32[64,128], index: 5, kind: input, shape index: {}]   ;;  %s1360_s6 = inlined_call_operand.vmem [shape: f32[1,128], index: 6, kind: input, shape index: {}]   ;;  %s1361_s7 = inlined_call_operand.hbm [shape: f32[2,16,128], index: 7, kind: output, shape index: {}]  }
   0x1   :  { %1364 = sst [smem:[#allocation17_spill]] %s1355_s1 }
   0x2   :  { %12 = vsyncpa [#allocation5], 0 }
   0x3   :  { %14 = vsyncpa [#allocation5 + $0x1], 0 }
   0x4   :  { %15 = vsyncpa [#allocation8], 0 }
   0x5   :  { %16 = vsyncpa [#allocation11], 0 }
   0x6   :  { %17 = vsyncpa [#allocation6], 0 }
   0x7   :  { %19 = vsyncpa [#allocation6 + $0x1], 0  ;;  %s1149_s24 = smov 0   ;;  %s1151_s25 = smov 0  }
   0x8   :  { %s1153_s26 = smov 0   ;;  %s1155_s27 = smov 0  }
   0x9 LB: > { %s1170_s28 = sadd.s32 4294967295, %s1099_s27   ;;  %s790_s29 = sadd.s32 4294967294, %s1099_s27   ;;  %s1099_s27 = sphi %s1155_s27, %s1378_s27   ;;  %s1095_s26 = sphi %s1153_s26, %s1377_s26   ;;  %s1091_s25 = sphi %s1151_s25, %s1376_s25   ;;  %s1087_s24 = sphi %s1149_s24, %s1375_s24  }
   0xa   : > { %p45_p0 = scmp.ne.s32.totalorder %s1091_s25, %s1087_s24  ;;  %p46_p1 = scmp.eq.s32.totalorder %s1170_s28, 0 }
   0xb   : > { %p195_p2 = scmp.eq.s32.totalorder %s1170_s28, 1  ;;  %p201_p3 = scmp.eq.s32.totalorder %s790_s29, 1 }
   0xc   : > { %p1179_p4 = por %p46_p1, %p45_p0  ;;  %p791_p5 = scmp.ge.s32.totalorder %s1099_s27, 1 }
   0xd   : > { %p1184_p6 = por %p201_p3, %p45_p0  ;;  %p208_p7 = scmp.lt.s32.totalorder %s1099_s27, 3 }
   0xe   : > { %s1367_s1 = sld [smem:[#allocation17_spill]]  ;;  %s1101_s13 = smov [#allocation7]  }
   0xf   : > { %p1192_p8 = pnand %p791_p5, %p208_p7  ;;  %s221_s14 = sshll.u32 %s1101_s13, 4  ;;  %s222_s14 = int_to_ptr.vmem [resolvable:$true] %s221_s14 }
  0x10   : > { %s236_s18 = sshll.u32 %s1357_s3, 4  ;;  %s1362_s19 = smov 128   ;;  %s237_s18 = int_to_ptr.hbm [resolvable:$true] %s236_s18 }
  0x11   : > { %p836_p9 = pneg %p1192_p8  ;;  %s1363_s20 = smov 8  }
  0x12   : > { %s1104_s21 = smov [#allocation9]   ;;  %s253_s9 = sshll.u32 %s1359_s5, 4  ;;  %s254_s9 = int_to_ptr.hbm [resolvable:$true] %s253_s9 }
  0x13   : > { %p1200_p10 = pnand %p836_p9, %p46_p1  ;;  %s238_s22 = sshll.u32 %s1104_s21, 4  ;;  %s239_s22 = int_to_ptr.vmem [resolvable:$true] %s238_s22 }
  0x14   : > { %s219_s11 = sshll.u32 %s1367_s1, 4  ;;  %s1105_s10 = smov [#allocation10]   ;;  %s220_s11 = int_to_ptr.hbm [resolvable:$true] %s219_s11 }
  0x15   : > { %839 = dma.hbm_to_vmem [thread:$0]  (!%p1200_p10), %s220_s11, 3072, %s222_s14, [#allocation8], %s1362_s19, %s1362_s19, %s1363_s20  }
  0x16   : > { %842 = dma.hbm_to_vmem [thread:$0]  (!%p1200_p10), %s237_s18, 6144, %s239_s22, [#allocation8], %s1362_s19, %s1362_s19, %s1363_s20  }
  0x17   : > { %s255_s11 = sshll.u32 %s1105_s10, 4  ;;  %s1222_s13 = sadd.s32 1, %s1099_s27   ;;  %s256_s11 = int_to_ptr.vmem [resolvable:$true] %s255_s11 }
  0x18   : > { %845 = dma.hbm_to_vmem [thread:$0]  (!%p1200_p10), %s254_s9, 1024, %s256_s11, [#allocation11], %s1362_s19, %s1362_s19, %s1363_s20  }
  0x19   : > { %s29_s14 = ssub.s32 %s1099_s27, %s1222_s13  ;;  %s32_s16 = sadd.s32 1, %s1095_s26 }
  0x1a   : > { %p30_p12 = scmp.eq.s32.totalorder %s29_s14, 0  ;;  %p39_p13 = scmp.ne.s32.totalorder %s1095_s26, %s1091_s25 }
  0x1b   : > { %p40_p0 = scmp.eq.s32.totalorder %s1099_s27, 0  ;;  %p857_p5 = scmp.lt.s32.totalorder %s1099_s27, 2 }
  0x1c   : > { %s1236_s17 = scalar_select %p30_p12, %s1095_s26, %s32_s16  }
  0x1d   : > { %p1240_p3 = por %p195_p2, %p39_p13  ;;  %s272_s21 = sand.u32 1, %s1095_s26  }
  0x1e   : > { %s818_s15 = sshll.u32 %s1099_s27, 4  ;;  %p41_p7 = por %p40_p0, %p39_p13 }
  0x1f   : > { %s796_s22 = sshll.u32 %s272_s21, 4  ;;  %s281_s9 = scalar_lea.hbm %s1354_s0, %s818_s15 }
  0x20   : > { %s282_s10 = sshll.u32 %s281_s9, 4  ;;  %s276_s11 = scalar_lea.vmem [#allocation4], %s796_s22  ;;  %s283_s10 = int_to_ptr.hbm [resolvable:$true] %s282_s10 }
  0x21   : > { %s284_s14 = sshll.u32 %s276_s11, 4  ;;  %p1250_p9 = pnand %p857_p5, %p41_p7  ;;  %s285_s14 = int_to_ptr.vmem [resolvable:$true] %s284_s14 }
  0x22   : > { %s273_s19 = scalar_lea.sflag [#allocation5], %s272_s21  ;;  %s995_s20 = sshra.s32 %s283_s10, 4  ;;  %s996_s20 = int_to_ptr.hbm [resolvable:$true] %s995_s20 }
  0x23   : > { %s997_s1 = scalar_lea.hbm %s996_s20, 16  ;;  %p999_p10 = pneg %p1250_p9 }
  0x24   : > { %p998_p2 = scmp.ne.s32.totalorder %s996_s20, %s997_s1  ;;  %s1002_s22 = scalar_lea.hbm %s1354_s0, 32 }
  0x25   : > { %p1003_p0 = scmp.lt.s32.totalorder %s996_s20, %s1354_s0  ;;  %p1004_p5 = scmp.lt.s32.totalorder %s1002_s22, %s997_s1 }
  0x26   : > { %p1000_p12 = pnand %p999_p10, %p998_p2 }
  0x27   : > { %p1005_p7 = por %p1004_p5, %p1003_p0 }
  0x28   : > { %p1001_p13 = pneg %p1000_p12 }
  0x2a   : > { %p1006_p11 = pnand %p1005_p7, %p1001_p13 }
  0x2c   : > { %1009 = shalt.err (!%p1006_p11)
}
  0x2d   : > { %s1372_s21 = smov 8   ;;  %s1373_s11 = smov 128  }
  0x2e   : > { %849 = dma.hbm_to_vmem [thread:$0]  (!%p1250_p9), %s283_s10, 256, %s285_s14, %s273_s19, %s1373_s11, %s1373_s11, %s1372_s21  }
  0x2f   : > { %296 = sbr.rel (%p1192_p8) target bundleno = 375 (0x177), region = 48  ;;  %s1270_s15 = sand.u32 (!%p1192_p8), 1, %s1091_s25  }
  0x30   : > { %s800_s1 = sshll.u32 (!%p1192_p8), %s1270_s15, 4  ;;  %s299_s20 = scalar_lea.sflag (!%p1192_p8), [#allocation5], %s1270_s15 }
  0x31   : > { %s1276_s23 = scalar_lea.vmem (!%p1192_p8), [#allocation4], %s800_s1 }
  0x34   : > { %1070 = dma.done.wait (%p1179_p4), %s299_s20, 256  }
  0x35   : > { %1072 = vsyncadd (%p1179_p4), %s299_s20, 4294967040 }
  0x36   : > { %1074 = dma.done.wait (%p46_p1), [#allocation8], 9216  }
  0x37   : > { %1076 = vsyncadd (%p46_p1), [#allocation8], 4294958080 }
  0x38   : > { %1078 = dma.done.wait (%p46_p1), [#allocation11], 1024  }
  0x39   : > { %1080 = vsyncadd (%p46_p1), [#allocation11], 4294966272  ;;  %vm349_vm0 = vcmask 516096   ;;  %v1106_v0 = vmov 0.0   ;;  %v446_v1 = vld [vmem:[#allocation7 + $0xb8] sm:$0xff]  ;;  %v445_v2 = vld [vmem:[#allocation7 + $0xb0] sm:$0xff] }
  0x3a   : > { %350 = vst.msk [vmem:[#allocation2] sm:$0x1] %vm349_vm0, %v1106_v0  ;;  %v377_v3 = vld [vmem:[#allocation7 + $0x78] sm:$0xff]  ;;  %461 = vmatpush.msra.mxu2 %v446_v1  ;;  %v376_v5 = vld [vmem:[#allocation7 + $0x70] sm:$0xff]  ;;  %v444_v6 = vld [vmem:[#allocation7 + $0xa8] sm:$0xff]  ;;  %vm354_vm1 = vcmask 523264  }
  0x3b   : > { %351 = vst.msk [vmem:[#allocation2 + $0x11] sm:$0x1] %vm349_vm0, %v1106_v0  ;;  %392 = vmatpush.msra.mxu0 %v377_v3  ;;  %v366_v4 = vld [vmem:[#allocation7 + $0x38] sm:$0xff]  ;;  %v365_v7 = vld [vmem:[#allocation7 + $0x30] sm:$0xff]  ;;  %v375_v8 = vld [vmem:[#allocation7 + $0x68] sm:$0xff]  ;;  %s819_s22 = sshll.u32 %s1170_s28, 4 }
  0x3c   : > { %486 = vst [vmem:[#allocation3] sm:$0x1] %v1106_v0  ;;  %421 = vmatpush.msra.mxu1 %v366_v4  ;;  %462 = vmatpush.msra.mxu2 %v445_v2  ;;  %v364_v9 = vld [vmem:[#allocation7 + $0x28] sm:$0xff]  ;;  %v443_v10 = vld [vmem:[#allocation7 + $0xa0] sm:$0xff]  ;;  %v442_v13 = vld [vmem:[#allocation7 + $0x98] sm:$0xff]  ;;  %s684_s21 = scalar_lea.hbm %s1361_s7, %s819_s22  ;;  %s348_s11 = scalar_lea.vmem [#allocation12], %s800_s1 }
  0x3d   : > { %487 = vst [vmem:[#allocation3 + $0x11] sm:$0x1] %v1106_v0  ;;  %393 = vmatpush.msra.mxu0 %v376_v5  ;;  %v374_v11 = vld [vmem:[#allocation7 + $0x60] sm:$0xff]  ;;  %v373_v14 = vld [vmem:[#allocation7 + $0x58] sm:$0xff]  ;;  %v441_v18 = vld [vmem:[#allocation7 + $0x90] sm:$0xff]  ;;  %s685_s20 = sshll.u32 %s348_s11, 4  ;;  %s686_s20 = int_to_ptr.vmem [resolvable:$true] %s685_s20 }
  0x3e   : > { %422 = vmatpush.msra.mxu1 %v365_v7  ;;  %463 = vmatpush.msra.mxu2 %v444_v6  ;;  %v363_v12 = vld [vmem:[#allocation7 + $0x20] sm:$0xff]  ;;  %v362_v16 = vld [vmem:[#allocation7 + $0x18] sm:$0xff]  ;;  %v372_v19 = vld [vmem:[#allocation7 + $0x50] sm:$0xff]  ;;  %s673_s28 = scalar_lea.sflag [#allocation6], %s1270_s15  ;;  %s1045_s10 = scalar_lea.hbm %s1361_s7, 32 }
  0x3f   : > { %394 = vmatpush.msra.mxu0 %v375_v8  ;;  %v1291_v15 = vld [vmem:[%s1276_s23] sm:$0xff]  ;;  %v1294_v17 = vld [vmem:[%s1276_s23 + $0x8] sm:$0xff]  ;;  %s687_s23 = sshll.u32 %s684_s21, 4  ;;  %s688_s23 = int_to_ptr.hbm [resolvable:$true] %s687_s23 }
  0x40   : > { %423 = vmatpush.msra.mxu1 %v364_v9  ;;  %464 = vmatpush.msra.mxu2 %v443_v10  ;;  %355 = vst.msk [vmem:[#allocation2 + $0x1] sm:$0xff] %vm354_vm1, %v1291_v15  ;;  %v526_v20 = vld [vmem:[#allocation9 + $0xf8] sm:$0xff]  ;;  %v361_v21 = vld [vmem:[#allocation7 + $0x10] sm:$0xff]  ;;  %v440_v23 = vld [vmem:[#allocation7 + $0x88] sm:$0xff]  ;;  %s1039_s30 = sshra.s32 %s688_s23, 4  ;;  %s1040_s30 = int_to_ptr.hbm [resolvable:$true] %s1039_s30 }
  0x41   : > { %395 = vmatpush.msra.mxu0 %v374_v11  ;;  %356 = vst.msk [vmem:[#allocation2 + $0x9] sm:$0xff] %vm354_vm1, %v1294_v17  ;;  %v525_v22 = vld [vmem:[#allocation9 + $0xf0] sm:$0xff]  ;;  %v371_v24 = vld [vmem:[#allocation7 + $0x48] sm:$0xff]  ;;  %527 = vmatpush.msra.mxu3 %v526_v20  ;;  %v439_v27 = vld [vmem:[#allocation7 + $0x80] sm:$0xff]  ;;  %s1041_s12 = scalar_lea.hbm %s1040_s30, 16  ;;  %p1046_p11 = scmp.lt.s32.totalorder %s1040_s30, %s1361_s7 }
  0x42   : > { %424 = vmatpush.msra.mxu1 %v363_v12  ;;  %465 = vmatpush.msra.mxu2 %v442_v13  ;;  %v360_v25 = vld [vmem:[#allocation7 + $0x8] sm:$0xff]  ;;  %v370_v28 = vld [vmem:[#allocation7 + $0x40] sm:$0xff]  ;;  %v507_v33 = vld [vmem:[#allocation9 + $0x78] sm:$0xff]  ;;  %p1042_p1 = scmp.ne.s32.totalorder %s1040_s30, %s1041_s12  ;;  %p1047_p9 = scmp.lt.s32.totalorder %s1045_s10, %s1041_s12 }
  0x43   : > { %396 = vmatpush.msra.mxu0 %v373_v14  ;;  %v524_v26 = vld [vmem:[#allocation9 + $0xe8] sm:$0xff]  ;;  %528 = vmatpush.msra.mxu3 %v525_v22  ;;  %v359_v29 = vld [vmem:[#allocation7] sm:$0xff]  ;;  %v591_v35 = vld [vmem:[#allocation9 + $0x178] sm:$0xff] }
  0x44   : > { %425 = vmatpush.msra.mxu1 %v362_v16  ;;  %466 = vmatpush.msra.mxu2 %v441_v18  ;;  %v523_v34 = vld [vmem:[#allocation9 + $0xe0] sm:$0xff]  ;;  %v506_v36 = vld [vmem:[#allocation9 + $0x70] sm:$0xff]  ;;  %v522_v37 = vld [vmem:[#allocation9 + $0xd8] sm:$0xff]  ;;  %p1043_p4 = pnand %p1042_p1, %p1240_p3  ;;  %p1048_p2 = por %p1047_p9, %p1046_p11 }
  0x45   : > { %397 = vmatpush.msra.mxu0 %v372_v19  ;;  %529 = vmatpush.msra.mxu3 %v524_v26  ;;  %v590_v38 = vld [vmem:[#allocation9 + $0x170] sm:$0xff]  ;;  %v505_v39 = vld [vmem:[#allocation9 + $0x68] sm:$0xff]  ;;  %v504_v43 = vld [vmem:[#allocation9 + $0x60] sm:$0xff] }
  0x46   : > { %426 = vmatpush.msra.mxu1 %v361_v21  ;;  %467 = vmatpush.msra.mxu2 %v440_v23  ;;  %v521_v40 = vld [vmem:[#allocation9 + $0xd0] sm:$0xff]  ;;  %v589_v41 = vld [vmem:[#allocation9 + $0x168] sm:$0xff]  ;;  %v503_v46 = vld [vmem:[#allocation9 + $0x58] sm:$0xff]  ;;  %p1044_p8 = pneg %p1043_p4 }
  0x47   : > { %398 = vmatpush.msra.mxu0 %v371_v24  ;;  %v367_v30 = vld [vmem:[#allocation2 + $0x1] sm:$0xff]  ;;  %530 = vmatpush.msra.mxu3 %v523_v34  ;;  %v520_v47 = vld [vmem:[#allocation9 + $0xc8] sm:$0xff]  ;;  %v519_v50 = vld [vmem:[#allocation9 + $0xc0] sm:$0xff] }
  0x48   : > { %427 = vmatpush.msra.mxu1 %v360_v25  ;;  %v357_v31 = vld [vmem:[#allocation2] sm:$0xff]  ;;  %468 = vmatpush.msra.mxu2 %v439_v27  ;;  %v437_v42 = vld [vmem:[#allocation2 + $0xa] sm:$0xff]  ;;  %v501_v49 = vld [vmem:[#allocation9 + $0x48] sm:$0xff]  ;;  %p1049_p10 = pnand %p1048_p2, %p1044_p8 }
  0x49   : > { %v436_v32 = vld [vmem:[#allocation2 + $0x2] sm:$0xff]  ;;  %399 = vmatpush.msra.mxu0 %v370_v28  ;;  %531 = vmatpush.msra.mxu3 %v522_v37  ;;  %v516_v53 = vld [vmem:[#allocation9 + $0xa8] sm:$0xff]  ;;  %v500_v54 = vld [vmem:[#allocation9 + $0x40] sm:$0xff] }
  0x4a   : > { %809 = vmatmul.msk.f32.vlgmr.msra.gmra.mxu2 %vm354_vm1, %v436_v32  ;;  %428 = vmatpush.msra.mxu1 %v359_v29  ;;  %v368_v44 = vld [vmem:[#allocation2 + $0x9] sm:$0xff]  ;;  %v502_v48 = vld [vmem:[#allocation9 + $0x50] sm:$0xff]  ;;  %v497_v0 = vld [vmem:[#allocation9 + $0x28] sm:$0xff] }
  0x4b   : > { %805 = vmatmul.msk.f32.vlgmr.msra.gmra.mxu0 %vm354_vm1, %v367_v30  ;;  %807 = vmatmul.msk.f32.vlgmr.msra.gmra.mxu1 %vm354_vm1, %v357_v31  ;;  %v358_v45 = vld [vmem:[#allocation2 + $0x8] sm:$0xff]  ;;  %v517_v52 = vld [vmem:[#allocation9 + $0xb0] sm:$0xff]  ;;  %v588_v55 = vld [vmem:[#allocation9 + $0x160] sm:$0xff] }
  0x4c   : > { %550 = vmatpush.msrb.mxu0 %v507_v33  ;;  %592 = vmatpush.msrb.mxu1 %v591_v35  ;;  %v518_v51 = vld [vmem:[#allocation9 + $0xb8] sm:$0xff]  ;;  %v515_v56 = vld [vmem:[#allocation9 + $0xa0] sm:$0xff]  ;;  %v498_v60 = vld [vmem:[#allocation9 + $0x30] sm:$0xff] }
  0x4d   : > { %532 = vmatpush.msra.mxu3 %v521_v40  ;;  %v499_v57 = vld [vmem:[#allocation9 + $0x38] sm:$0xff]  ;;  %v586_v61 = vld [vmem:[#allocation9 + $0x150] sm:$0xff]  ;;  %v585_v1 = vld [vmem:[#allocation9 + $0x148] sm:$0xff] }
  0x4e   : > { %551 = vmatpush.msrb.mxu0 %v506_v36  ;;  %593 = vmatpush.msrb.mxu1 %v590_v38  ;;  %v587_v58 = vld [vmem:[#allocation9 + $0x158] sm:$0xff]  ;;  %v513_v62 = vld [vmem:[#allocation9 + $0x90] sm:$0xff]  ;;  %v512_v2 = vld [vmem:[#allocation9 + $0x88] sm:$0xff] }
  0x4f   : > { %533 = vmatpush.msra.mxu3 %v520_v47  ;;  %v514_v59 = vld [vmem:[#allocation9 + $0x98] sm:$0xff]  ;;  %v631_v3 = vld [vmem:[#allocation10 + $0x30] sm:$0xff]  ;;  %v496_v4 = vld [vmem:[#allocation9 + $0x20] sm:$0xff] }
  0x50   : > { %552 = vmatpush.msrb.mxu0 %v505_v39  ;;  %594 = vmatpush.msrb.mxu1 %v589_v41  ;;  %v632_v63 = vld [vmem:[#allocation10 + $0x38] sm:$0xff]  ;;  %v584_v5 = vld [vmem:[#allocation9 + $0x140] sm:$0xff]  ;;  %v630_v7 = vld [vmem:[#allocation10 + $0x28] sm:$0xff] }
  0x51   : > { %534 = vmatpush.msra.mxu3 %v519_v50  ;;  %651 = vmatpush.msrb.mxu2 %v632_v63  ;;  %v511_v6 = vld [vmem:[#allocation9 + $0x80] sm:$0xff]  ;;  %v495_v8 = vld [vmem:[#allocation9 + $0x18] sm:$0xff]  ;;  %v494_v11 = vld [vmem:[#allocation9 + $0x10] sm:$0xff] }
  0x52   : > { %810 = vmatmul.msk.f32.gmra.mxu2 %vm354_vm1, %v437_v42  ;;  %553 = vmatpush.msrb.mxu0 %v504_v43  ;;  %v583_v9 = vld [vmem:[#allocation9 + $0x138] sm:$0xff]  ;;  %v629_v10 = vld [vmem:[#allocation10 + $0x20] sm:$0xff]  ;;  %v582_v12 = vld [vmem:[#allocation9 + $0x130] sm:$0xff] }
  0x53   : > { %806 = vmatmul.msk.f32.gmra.mxu0 %vm354_vm1, %v368_v44  ;;  %808 = vmatmul.msk.f32.gmra.mxu1 %vm354_vm1, %v358_v45  ;;  %v628_v13 = vld [vmem:[#allocation10 + $0x18] sm:$0xff]  ;;  %v493_v14 = vld [vmem:[#allocation9 + $0x8] sm:$0xff]  ;;  %v627_v18 = vld [vmem:[#allocation10 + $0x10] sm:$0xff] }
  0x54   : > { %554 = vmatpush.msrb.mxu0 %v503_v46  ;;  %535 = vmatpush.msra.mxu3 %v518_v51  ;;  %v581_v16 = vld [vmem:[#allocation9 + $0x128] sm:$0xff]  ;;  %v492_v19 = vld [vmem:[#allocation9] sm:$0xff]  ;;  %v579_v22 = vld [vmem:[#allocation9 + $0x118] sm:$0xff] }
  0x55   : > { %595 = vmatpush.msrb.mxu1 %v588_v55  ;;  %652 = vmatpush.msrb.mxu2 %v631_v3  ;;  %v580_v20 = vld [vmem:[#allocation9 + $0x120] sm:$0xff]  ;;  %v626_v21 = vld [vmem:[#allocation10 + $0x8] sm:$0xff]  ;;  %v578_v24 = vld [vmem:[#allocation9 + $0x110] sm:$0xff] }
  0x56   : > { %555 = vmatpush.msrb.mxu0 %v502_v48  ;;  %536 = vmatpush.msra.mxu3 %v517_v52  ;;  %v625_v23 = vld [vmem:[#allocation10] sm:$0xff]  ;;  %v577_v25 = vld [vmem:[#allocation9 + $0x108] sm:$0xff]  ;;  %v902_v30 = vld [vmem:[%s1356_s2] ss:$0 sm:$0xff] }
  0x57   : > { %596 = vmatpush.msrb.mxu1 %v587_v58  ;;  %653 = vmatpush.msrb.mxu2 %v630_v7  ;;  %v576_v26 = vld [vmem:[#allocation9 + $0x100] sm:$0xff]  ;;  %v904_v47 = vld [vmem:[%s1360_s6] ss:$0 sm:$0xff] }
  0x58   : > { %556 = vmatpush.msrb.mxu0 %v501_v49  ;;  %537 = vmatpush.msra.mxu3 %v516_v53  ;;  %v903_v49 = vld [vmem:[%s1358_s4] ss:$0 sm:$0xff] }
  0x59   : > { %597 = vmatpush.msrb.mxu1 %v586_v61  ;;  %654 = vmatpush.msrb.mxu2 %v629_v10 }
  0x5a   : > { %557 = vmatpush.msrb.mxu0 %v500_v54  ;;  %538 = vmatpush.msra.mxu3 %v515_v56 }
  0x5b   : > { %598 = vmatpush.msrb.mxu1 %v585_v1  ;;  %655 = vmatpush.msrb.mxu2 %v628_v13 }
  0x5c   : > { %558 = vmatpush.msrb.mxu0 %v499_v57  ;;  %539 = vmatpush.msra.mxu3 %v514_v59 }
  0x5d   : > { %599 = vmatpush.msrb.mxu1 %v584_v5  ;;  %656 = vmatpush.msrb.mxu2 %v627_v18 }
  0x5e   : > { %559 = vmatpush.msrb.mxu0 %v498_v60  ;;  %540 = vmatpush.msra.mxu3 %v513_v62 }
  0x5f   : > { %600 = vmatpush.msrb.mxu1 %v583_v9  ;;  %657 = vmatpush.msrb.mxu2 %v626_v21 }
  0x60   : > { %560 = vmatpush.msrb.mxu0 %v497_v0  ;;  %541 = vmatpush.msra.mxu3 %v512_v2 }
  0x61   : > { %601 = vmatpush.msrb.mxu1 %v582_v12  ;;  %658 = vmatpush.msrb.mxu2 %v625_v23 }
  0x62   : > { %561 = vmatpush.msrb.mxu0 %v496_v4  ;;  %542 = vmatpush.msra.mxu3 %v511_v6 }
  0x63   : > { %602 = vmatpush.msrb.mxu1 %v581_v16  ;;  %811 = vmatmul.msk.f32.vlgmr.msrb.gmra.mxu2 %vm354_vm1, %v1291_v15 }
  0x64   : > { %562 = vmatpush.msrb.mxu0 %v495_v8 }
  0x65   : > { %603 = vmatpush.msrb.mxu1 %v580_v20 }
  0x66   : > { %563 = vmatpush.msrb.mxu0 %v494_v11 }
  0x67   : > { %604 = vmatpush.msrb.mxu1 %v579_v22 }
  0x68   : > { %564 = vmatpush.msrb.mxu0 %v493_v14 }
  0x69   : > { %605 = vmatpush.msrb.mxu1 %v578_v24 }
  0x6a   : > { %565 = vmatpush.msrb.mxu0 %v492_v19 }
  0x6b   : > { %606 = vmatpush.msrb.mxu1 %v577_v25  ;;  %812 = vmatmul.msk.f32.gmra.mxu2 %vm354_vm1, %v1294_v17 }
  0x6d   : > { %607 = vmatpush.msrb.mxu1 %v576_v26 }
  0xc8   : > { %v401_v27 = vpop.f32.mrf.mxu0  ;;  %v430_v28 = vpop.f32.mrf.mxu1 }
  0xc9   : > { %v431_v29 = vadd.f32 %v430_v28, %v401_v27 }
  0xcd   : > { %v470_v31 = vpop.f32.mrf.mxu2 }
  0xce   : > { %v476_v32 = vadd.f32 %v470_v31, %v431_v29 }
  0xd0   : > { %v482_v33 = vadd.f32 %v902_v30, %v476_v32  ;;  %v404_v34 = vpop.f32.mrf.mxu0  ;;  %v433_v35 = vpop.f32.mrf.mxu1 }
  0xd1   : > { %v434_v15 = vadd.f32 %v433_v35, %v404_v34 }
  0xd2   : > { %v484_v36 = vmax.f32 %v482_v33, 0.0 }
  0xd4   : > { %488 = vst [vmem:[#allocation3 + $0x1] sm:$0xff] %v484_v36  ;;  %543 = vmatmul.f32.vlgmr.msra.gmra.mxu3 %v484_v36 }
  0xd5   : > { %v473_v37 = vpop.f32.mrf.mxu2 }
  0xd6   : > { %v477_v38 = vadd.f32 %v473_v37, %v434_v15 }
  0xd8   : > { %v483_v39 = vadd.f32 %v902_v30, %v477_v38 }
  0xda   : > { %v485_v40 = vmax.f32 %v483_v39, 0.0 }
  0xdb   : > { %v490_v41 = vld [vmem:[#allocation3] sm:$0xff] }
  0xdc   : > { %489 = vst [vmem:[#allocation3 + $0x9] sm:$0xff] %v485_v40  ;;  %566 = vmatmul.f32.vlgmr.msrb.gmra.mxu0 %v490_v41  ;;  %546 = vmatmul.f32.gmra.mxu3 %v485_v40 }
  0xe3   : > { %v491_v17 = vld [vmem:[#allocation3 + $0x8] sm:$0xff] }
  0xe4   : > { %v573_v42 = vld [vmem:[#allocation3 + $0x2] sm:$0xff]  ;;  %569 = vmatmul.f32.gmra.mxu0 %v491_v17  ;;  %v574_v43 = vld [vmem:[#allocation3 + $0xa] sm:$0xff] }
  0xe5   : > { %608 = vmatmul.f32.vlgmr.msrb.gmra.mxu1 %v573_v42 }
  0xe6   : > { %v660_v46 = vpop.f32.mrf.mxu2 }
  0xe7   : > { %v661_v52 = vadd.f32 %v904_v47, %v660_v46 }
  0xed   : > { %611 = vmatmul.f32.gmra.mxu1 %v574_v43 }
  0xee   : > { %v663_v57 = vpop.f32.mrf.mxu2 }
  0xef   : > { %v664_v62 = vadd.f32 %v904_v47, %v663_v57 }
 0x157   : > { %v544_v45 = vpop.f32.mrf.mxu3 }
 0x159   : > { %v567_v44 = vpop.f32.mrf.mxu0 }
 0x15a   : > { %v568_v48 = vadd.f32 %v567_v44, %v544_v45 }
 0x15f   : > { %v547_v56 = vpop.f32.mrf.mxu3 }
 0x161   : > { %v570_v54 = vpop.f32.mrf.mxu0 }
 0x162   : > { %v609_v50 = vpop.f32.mrf.mxu1  ;;  %v571_v59 = vadd.f32 %v570_v54, %v547_v56 }
 0x163   : > { %v615_v51 = vadd.f32 %v609_v50, %v568_v48 }
 0x165   : > { %v621_v53 = vadd.f32 %v903_v49, %v615_v51 }
 0x167   : > { %v666_v55 = vadd.f32 %v661_v52, %v621_v53 }
 0x169   : > { %v668_v58 = vmax.f32 %v666_v55, 0.0 }
 0x16a   : > { %v612_v60 = vpop.f32.mrf.mxu1 }
 0x16b   : > { %670 = vst [vmem:[%s348_s11] sm:$0xff] %v668_v58  ;;  %v616_v61 = vadd.f32 %v612_v60, %v571_v59 }
 0x16d   : > { %v622_v63 = vadd.f32 %v903_v49, %v616_v61 }
 0x16f   : > { %v667_v0 = vadd.f32 %v664_v62, %v622_v63 }
 0x171   : > { %v669_v1 = vmax.f32 %v667_v0, 0.0 }
 0x173   : > { %671 = vst [vmem:[%s348_s11 + $0x8] sm:$0xff] %v669_v1 }
 0x174   : > { %1052 = shalt.err (!%p1049_p10)
}
 0x175   : > { %s1107_s15 = smov 128   ;;  %s1108_s22 = smov 8  }
 0x176   : > { %834 = dma.vmem_to_hbm [thread:$0]  (%p1240_p3), %s686_s20, 256, %s688_s23, %s673_s28, %s1107_s15, %s1107_s15, %s1108_s22  }
 0x177 PF: > { %s702_s29 = sand.u32 1, %s1087_s24   ;;  %p1374_p12 = scmp.ge.s32.totalorder %s1099_s27, 2 }
 0x178   : > { %s703_s9 = scalar_lea.sflag [#allocation6], %s702_s29 }
 0x179   : > { %p851_p13 = pnand %p1374_p12, %p1184_p6 }
 0x17b   : > { %p852_p0 = pneg %p851_p13 }
 0x17d   : > { %1082 = dma.done.wait (%p852_p0), %s703_s9, 256  }
 0x17e   : > { %1084 = vsyncadd (%p852_p0), %s703_s9, 4294967040  ;;  %p22_p5 = scmp.ge.s32.totalorder %s1222_s13, 4   ;;  %s1375_s24 = smov %s1091_s25 }
 0x17f   : > { %s1376_s25 = smov %s1095_s26  ;;  %s1377_s26 = smov %s1236_s17 }
 0x180   : > { %s1378_s27 = smov %s1222_s13  ;;  %24 = sbr.rel (!%p22_p5) target bundleno = 9 (0x9), region = 109 }
 0x185   :  { %709 = vsyncpa [#allocation5], 1 }
 0x186   :  { %711 = vsyncpa [#allocation5 + $0x1], 1 }
 0x187   :  { %712 = vsyncpa [#allocation8], 1 }
 0x188   :  { %713 = vsyncpa [#allocation11], 1 }
 0x189   :  { %714 = vsyncpa [#allocation6], 1 }
 0x18a   :  { %716 = vsyncpa [#allocation6 + $0x1], 1 }

</bundles_post_ra>
